<compile_context>
chip_gen: v7x
topology: tpu7x:2x2x1
jax: 0.10.0
libtpu: 0.0.40
codegen_flags: <defaults>
</compile_context>

<pallas_src>
import functools

import jax
import jax.numpy as jnp
from jax import lax
from jax.experimental import pallas as pl
from jax.experimental.pallas import tpu as pltpu


def _round_up(x: int, m: int) -> int:
    return (x + m - 1) // m * m


def _cdiv(a: int, b: int) -> int:
    return -(-a // b)


def _soft_select_kernel(support_ref, query_ref, out_ref, *,
                        few_shot: int, dim: int, approx_recip: bool):
    support = support_ref[...]          # [F_pad, D], native dtype (bf16/f32)
    query = query_ref[...]              # [tm,    D], native dtype

    scale = jnp.float32(dim ** (-0.5))

    # score[b, f] = sum_d query[b, d] * support[f, d]
    # Contract last dims directly on the MXU -> no materialized transpose.
    score = lax.dot_general(
        query, support,
        dimension_numbers=(((1,), (1,)), ((), ())),
        preferred_element_type=jnp.float32,
    ) * scale                           # [tm, F_pad], f32

    # Mask padded few-shot columns so they contribute nothing to the softmax.
    if few_shot != support.shape[0]:
        col = lax.broadcasted_iota(jnp.int32, score.shape, 1)
        score = jnp.where(col < few_shot, score, jnp.float32(-1e30))

    # Numerically stable softmax over the few-shot axis (f32 math).
    m = jnp.max(score, axis=1, keepdims=True)
    p = jnp.exp(score - m)
    denom = jnp.sum(p, axis=1, keepdims=True)
    if approx_recip:
        att = p * pl.reciprocal(denom, approx=True)   # EUP slot, ~free
    else:
        att = p / denom

    # center = att @ support  (MXU, f32 accumulate).
    center = jnp.dot(att.astype(support.dtype), support,
                     preferred_element_type=jnp.float32)  # [tm, D]
    out_ref[...] = center.astype(out_ref.dtype)


def soft_select_prototype(support: jax.Array, query: jax.Array,
                          *, max_tile_rows: int = 1024,
                          approx_reciprocal: bool = True) -> jax.Array:
    """Pallas implementation of SoftSelectPrototype.forward."""
    assert support.ndim == 2 and query.ndim == 2
    assert support.shape[1] == query.shape[1]
    few_shot, dim = support.shape
    batch = query.shape[0]

    q_itemsize = jnp.dtype(query.dtype).itemsize
    s_itemsize = jnp.dtype(support.dtype).itemsize

    # Pad few_shot to the dtype-native sublane multiple (8/f32, 16/bf16,
    # 32/int8).  support is tiny relative to the streamed query, so this one
    # pad is cheap; padded columns are masked inside the kernel.
    f_mult = 8 * max(1, 4 // s_itemsize)
    f_pad = _round_up(few_shot, f_mult)
    support_p = support
    if f_pad != few_shot:
        support_p = jnp.pad(support, ((0, f_pad - few_shot), (0, 0)))

    # ---- generation-aware VMEM budget ------------------------------------
    try:
        physical_vmem = int(pltpu.get_tpu_info().vmem_capacity_bytes)
    except Exception:
        physical_vmem = 64 * 1024 * 1024   # smallest per-TC VMEM (v7x)
    budget = min(physical_vmem // 2, 96 * 1024 * 1024)
    vmem_limit = max(32 * 1024 * 1024,
                     min(physical_vmem * 3 // 4, budget + 16 * 1024 * 1024))

    # Resident support.  Budgeted double-buffered so the non-Buffered(1)
    # fallback path below always fits too.
    support_bytes = 2 * f_pad * dim * s_itemsize
    # Per batch-tile row: query + out DMA tiles (x2 buffers each), the f32
    # center intermediate, the f32 score/p/att intermediates, and the att cast.
    per_row_bytes = (4 * dim * q_itemsize      # query + out, double-buffered
                     + 4 * dim                 # f32 center
                     + 4 * f_pad * 4           # f32 score / p / att / stats
                     + f_pad * s_itemsize)     # att cast for the second matmul

    if support_bytes + 8 * per_row_bytes > budget:
        # TODO(synk): fall back to tiling over few_shot with an online-softmax
        # accumulator instead of requiring the whole support block in VMEM.
        raise ValueError(
            f"support block ({f_pad}x{dim}, {support_bytes / 2**20:.1f} MiB "
            f"double-buffered) does not fit the {budget / 2**20:.0f} MiB VMEM "
            "budget for a resident-support kernel")

    tm_cap = (budget - support_bytes) // per_row_bytes
    tm_max = max(8, (min(int(max_tile_rows), int(tm_cap)) // 8) * 8)

    # Distribute the batch evenly over tiles (keeps the trailing partial block
    # tiny) and require >= 2 grid steps when batch allows it so both v7x
    # TensorCores get work under dimension_semantics=("parallel",).
    n_tiles = _cdiv(batch, tm_max)
    if batch >= 16:
        n_tiles = max(n_tiles, 2)
    tm = _round_up(_cdiv(batch, n_tiles), 8)
    grid = (_cdiv(batch, tm),)

    kernel = functools.partial(_soft_select_kernel, few_shot=few_shot, dim=dim,
                               approx_recip=approx_reciprocal)

    cost = pl.CostEstimate(
        flops=4 * batch * few_shot * dim,
        transcendentals=batch * f_pad,
        bytes_accessed=(2 * batch * dim * q_itemsize     # query in + center out
                        + f_pad * dim * s_itemsize),      # support (read once)
    )
    params = pltpu.CompilerParams(
        dimension_semantics=("parallel",),
        vmem_limit_bytes=int(vmem_limit),
    )

    def call(support_spec):
        return pl.pallas_call(
            kernel,
            out_shape=jax.ShapeDtypeStruct((batch, dim), query.dtype),
            grid=grid,
            in_specs=[support_spec,
                      pl.BlockSpec((tm, dim), lambda i: (i, 0))],   # streamed
            out_specs=pl.BlockSpec((tm, dim), lambda i: (i, 0)),
            compiler_params=params,
            cost_estimate=cost,
        )(support_p, query)

    try:
        # Constant index_map + fetched once -> a single VMEM buffer suffices.
        out = call(pl.BlockSpec((f_pad, dim), lambda i: (0, 0),
                                pipeline_mode=pl.Buffered(1)))
    except Exception:
        # Older runtimes without single-buffer pipeline_mode support.
        out = call(pl.BlockSpec((f_pad, dim), lambda i: (0, 0)))
    return out


def _reference(support, query):
    scale = support.shape[1] ** (-0.5)
    score = (query.astype(jnp.float32) @ support.astype(jnp.float32).T) * scale
    att = jax.nn.softmax(score, axis=1)
    return att @ support.astype(jnp.float32)


if __name__ == "__main__":
    key = jax.random.PRNGKey(0)
    k_sup, k_qry = jax.random.split(key)

    # Case 1 (spec-sized, f32): few_shot=8, batch=2, dim=32.
    # Exercises a single-step grid with a partial (2-of-8 row) trailing block.
    few_shot, batch, dim = 8, 2, 32
    support = jax.random.normal(k_sup, (few_shot, dim), dtype=jnp.float32)
    query = jax.random.normal(k_qry, (batch, dim), dtype=jnp.float32)

    center = soft_select_prototype(support, query)
    center = jax.block_until_ready(center)

    ref = _reference(support, query)
    assert center.shape == (batch, dim)
    # approx=True reciprocal -> slightly looser tolerance than exact divide.
    assert jnp.allclose(center, ref, rtol=1e-2, atol=1e-2)

    # Case 2 (bf16): few_shot=5 (padded -> 16 for bf16 sublanes), dim=200
    # (not a multiple of 128 -> no-D-padding path), batch=90 -> 2 grid steps
    # with a partial trailing batch block.
    few_shot2, batch2, dim2 = 5, 90, 200
    sup2 = jax.random.normal(k_sup, (few_shot2, dim2), dtype=jnp.float32)
    qry2 = jax.random.normal(k_qry, (batch2, dim2), dtype=jnp.float32)
    out2 = soft_select_prototype(sup2.astype(jnp.bfloat16),
                                 qry2.astype(jnp.bfloat16))
    out2 = jax.block_until_ready(out2)
    ref2 = _reference(sup2, qry2)
    assert out2.shape == (batch2, dim2)
    assert jnp.allclose(out2.astype(jnp.float32), ref2, rtol=1e-1, atol=1e-1)

    print("KERNEL_OK")
</pallas_src>

<mosaic_0001>
module attributes {stable_mosaic.version = 11 : i64} {
  func.func @_soft_select_kernel(%arg0: i32, %arg1: memref<8x32xf32, #tpu.memory_space<vmem>>, %arg2: memref<8x32xf32, #tpu.memory_space<vmem>>, %arg3: memref<8x32xf32, #tpu.memory_space<vmem>>) attributes {dimension_semantics = [#tpu.dimension_semantics<parallel>], iteration_bounds = array<i64: 1>, scalar_prefetch = 0 : i64, scratch_operands = 0 : i64, tpu.core_type = #tpu.core_type<tc>, window_params = [{pipeline_mode = #tpu.pipeline_mode<synchronous>, transform_indices = @transform_0, window_bounds = array<i64: 8, 32>}, {transform_indices = @transform_1, window_bounds = array<i64: 8, 32>}, {transform_indices = @transform_2, window_bounds = array<i64: 8, 32>}]} {
    %c0 = arith.constant 0 : index
    %c0_0 = arith.constant 0 : index
    %0 = vector.load %arg1[%c0, %c0_0] : memref<8x32xf32, #tpu.memory_space<vmem>>, vector<8x32xf32>
    %c0_1 = arith.constant 0 : index
    %c0_2 = arith.constant 0 : index
    %1 = vector.load %arg2[%c0_1, %c0_2] : memref<8x32xf32, #tpu.memory_space<vmem>>, vector<8x32xf32>
    %cst = arith.constant dense<0.000000e+00> : vector<8x8xf32>
    %2 = tpu.matmul %1, %0, %cst {dimension_numbers = #tpu.dot_dimension_numbers<[1], [1], [0], [0], [0, 0, 1, 0], [], []>} : vector<8x32xf32>, vector<8x32xf32>, vector<8x8xf32> -> vector<8x8xf32>
    %cst_3 = arith.constant 0.176776692 : f32
    %3 = vector.broadcast %cst_3 : f32 to vector<8x8xf32>
    %4 = arith.mulf %2, %3 : vector<8x8xf32>
    %cst_4 = arith.constant dense<0xFF800000> : vector<8xf32>
    %5 = vector.multi_reduction <maximumf>, %4, %cst_4 [1] : vector<8x8xf32> to vector<8xf32>
    %6 = vector.shape_cast %5 : vector<8xf32> to vector<8x1xf32>
    %7 = vector.broadcast %6 : vector<8x1xf32> to vector<8x8xf32>
    %8 = arith.subf %4, %7 : vector<8x8xf32>
    %9 = math.exp %8 : vector<8x8xf32>
    %cst_5 = arith.constant dense<0.000000e+00> : vector<8xf32>
    %10 = vector.multi_reduction <add>, %9, %cst_5 [1] : vector<8x8xf32> to vector<8xf32>
    %11 = vector.shape_cast %10 : vector<8xf32> to vector<8x1xf32>
    %12 = tpu.reciprocal %11 {approx = true} : vector<8x1xf32> -> vector<8x1xf32>
    %13 = vector.broadcast %12 : vector<8x1xf32> to vector<8x8xf32>
    %14 = arith.mulf %9, %13 : vector<8x8xf32>
    %cst_6 = arith.constant dense<0.000000e+00> : vector<8x32xf32>
    %15 = tpu.matmul %14, %0, %cst_6 {dimension_numbers = #tpu.dot_dimension_numbers<[1], [0], [0], [1], [0, 0, 1, 1], [], []>} : vector<8x8xf32>, vector<8x32xf32>, vector<8x32xf32> -> vector<8x32xf32>
    %c0_7 = arith.constant 0 : index
    %c0_8 = arith.constant 0 : index
    %16 = vector.load %arg3[%c0_7, %c0_8] : memref<8x32xf32, #tpu.memory_space<vmem>>, vector<8x32xf32>
    tpu.vector_store %arg3[%c0_7, %c0_8], %15 {strides = array<i32>} : memref<8x32xf32, #tpu.memory_space<vmem>>, vector<8x32xf32>,
    return
  }
  func.func @transform_0(%arg0: i32) -> (i32, i32) {
    %c0_i32 = arith.constant 0 : i32
    %c0_i32_0 = arith.constant 0 : i32
    %c0_i32_1 = arith.constant 0 : i32
    return %c0_i32, %c0_i32_0 : i32, i32
  }
  func.func @transform_1(%arg0: i32) -> (i32, i32) {
    %c0_i32 = arith.constant 0 : i32
    %c0_i32_0 = arith.constant 0 : i32
    return %arg0, %c0_i32 : i32, i32
  }
  func.func @transform_2(%arg0: i32) -> (i32, i32) {
    %c0_i32 = arith.constant 0 : i32
    %c0_i32_0 = arith.constant 0 : i32
    return %arg0, %c0_i32 : i32, i32
  }
}

module attributes {stable_mosaic.version = 11 : i64} {
  func.func @_soft_select_kernel(%arg0: i32, %arg1: memref<8x32xf32, #tpu.memory_space<vmem>>, %arg2: memref<8x32xf32, #tpu.memory_space<vmem>>, %arg3: memref<8x32xf32, #tpu.memory_space<vmem>>) attributes {dimension_semantics = [#tpu.dimension_semantics<parallel>], iteration_bounds = array<i64: 1>, scalar_prefetch = 0 : i64, scratch_operands = 0 : i64, tpu.core_type = #tpu.core_type<tc>, window_params = [{pipeline_mode = #tpu.pipeline_mode<synchronous>, transform_indices = @transform_0, window_bounds = array<i64: 8, 32>}, {transform_indices = @transform_1, window_bounds = array<i64: 8, 32>}, {transform_indices = @transform_2, window_bounds = array<i64: 8, 32>}]} {
    %c0 = arith.constant 0 : index
    %c0_0 = arith.constant 0 : index
    %0 = vector.load %arg1[%c0, %c0_0] : memref<8x32xf32, #tpu.memory_space<vmem>>, vector<8x32xf32>
    %c0_1 = arith.constant 0 : index
    %c0_2 = arith.constant 0 : index
    %1 = vector.load %arg2[%c0_1, %c0_2] : memref<8x32xf32, #tpu.memory_space<vmem>>, vector<8x32xf32>
    %cst = arith.constant dense<0.000000e+00> : vector<8x8xf32>
    %2 = tpu.matmul %1, %0, %cst {dimension_numbers = #tpu.dot_dimension_numbers<[1], [1], [0], [0], [0, 0, 1, 0], [], []>} : vector<8x32xf32>, vector<8x32xf32>, vector<8x8xf32> -> vector<8x8xf32>
    %cst_3 = arith.constant 0.176776692 : f32
    %3 = vector.broadcast %cst_3 : f32 to vector<8x8xf32>
    %4 = arith.mulf %2, %3 : vector<8x8xf32>
    %cst_4 = arith.constant dense<0xFF800000> : vector<8xf32>
    %5 = vector.multi_reduction <maximumf>, %4, %cst_4 [1] : vector<8x8xf32> to vector<8xf32>
    %6 = vector.shape_cast %5 : vector<8xf32> to vector<8x1xf32>
    %7 = vector.broadcast %6 : vector<8x1xf32> to vector<8x8xf32>
    %8 = arith.subf %4, %7 : vector<8x8xf32>
    %9 = math.exp %8 : vector<8x8xf32>
    %cst_5 = arith.constant dense<0.000000e+00> : vector<8xf32>
    %10 = vector.multi_reduction <add>, %9, %cst_5 [1] : vector<8x8xf32> to vector<8xf32>
    %11 = vector.shape_cast %10 : vector<8xf32> to vector<8x1xf32>
    %12 = tpu.reciprocal %11 {approx = true} : vector<8x1xf32> -> vector<8x1xf32>
    %13 = vector.broadcast %12 : vector<8x1xf32> to vector<8x8xf32>
    %14 = arith.mulf %9, %13 : vector<8x8xf32>
    %cst_6 = arith.constant dense<0.000000e+00> : vector<8x32xf32>
    %15 = tpu.matmul %14, %0, %cst_6 {dimension_numbers = #tpu.dot_dimension_numbers<[1], [0], [0], [1], [0, 0, 1, 1], [], []>} : vector<8x8xf32>, vector<8x32xf32>, vector<8x32xf32> -> vector<8x32xf32>
    %c0_7 = arith.constant 0 : index
    %c0_8 = arith.constant 0 : index
    %16 = vector.load %arg3[%c0_7, %c0_8] : memref<8x32xf32, #tpu.memory_space<vmem>>, vector<8x32xf32>
    tpu.vector_store %arg3[%c0_7, %c0_8], %15 {strides = array<i32>} : memref<8x32xf32, #tpu.memory_space<vmem>>, vector<8x32xf32>,
    return
  }
  func.func @transform_0(%arg0: i32) -> (i32, i32) {
    %c0_i32 = arith.constant 0 : i32
    %c0_i32_0 = arith.constant 0 : i32
    %c0_i32_1 = arith.constant 0 : i32
    return %c0_i32, %c0_i32_0 : i32, i32
  }
  func.func @transform_1(%arg0: i32) -> (i32, i32) {
    %c0_i32 = arith.constant 0 : i32
    %c0_i32_0 = arith.constant 0 : i32
    return %arg0, %c0_i32 : i32, i32
  }
  func.func @transform_2(%arg0: i32) -> (i32, i32) {
    %c0_i32 = arith.constant 0 : i32
    %c0_i32_0 = arith.constant 0 : i32
    return %arg0, %c0_i32 : i32, i32
  }
}

</mosaic_0001>

<bundles_post_ra>
// kernel: tpu_custom_call.1
= control target key start
LH: loop header
LB: loop body
LE: loop exit
PB: predicated region body
PF: predicated region fallthrough
CT: control target
= control target key end

     0   :  { %7 = vsyncpa [#allocation3], 0  ;;  %s336_s0 = inlined_call_operand.hbm [shape: f32[8,32], index: 0, kind: input, shape index: {}]   ;;  %s337_s1 = inlined_call_operand.vmem [shape: f32[2,32], index: 1, kind: input, shape index: {}]   ;;  %s338_s2 = inlined_call_operand.hbm [shape: f32[2,32], index: 2, kind: output, shape index: {}]  }
   0x1   :  { %8 = vsyncpa [#allocation4], 0  ;;  %s282_s9 = smov [#allocation2]   ;;  %s234_s13 = scalar_lea.hbm %s336_s0, 128 }
   0x2   :  { %s15_s10 = sshll.u32 %s282_s9, 4  ;;  %p235_p0 = scmp.ne.s32.totalorder %s336_s0, %s234_s13  ;;  %s16_s10 = int_to_ptr.vmem [resolvable:$true] %s15_s10 }
   0x3   :  { %p238_p1 = scmp.lt.u32.totalorder %s234_s13, %s336_s0 }
   0x5   :  { %p240_p2 = pnand %p238_p1, %p235_p0 }
   0x7   :  { %243 = shalt.err (!%p240_p2)
}
   0x8   :  { %s244_s18 = scalar_lea.vmem %s16_s10, 128  ;;  %p249_p4 = scmp.lt.s32.totalorder %s16_s10, %s16_s10 }
   0x9   :  { %p245_p3 = scmp.ne.s32.totalorder %s16_s10, %s244_s18  ;;  %p250_p5 = scmp.lt.s32.totalorder %s244_s18, %s244_s18 }
   0xb   :  { %p251_p6 = por %p250_p5, %p249_p4 }
   0xd   :  { %p252_p7 = pnand %p251_p6, %p245_p3 }
   0xf   :  { %255 = shalt.err (!%p252_p7)
}
  0x10   :  { %18 = dma.hbm_to_vmem [thread:$0]  %s336_s0, 128, %s16_s10, [#allocation3]  }
  0x11   :  { %278 = dma.done.wait [#allocation3], 128  }
  0x12   :  { %279 = vsyncadd [#allocation3], 4294967168  ;;  %v283_v0 = vmov 0.0   ;;  %vm284_vm0 = vmmov 0   ;;  %vm26_vm1 = vcmask 261120   ;;  %v24_v1 = vld [vmem:[#allocation2] sm:$0xff] }
  0x13   :  { %214 = vmatprep.subr.mxu0 %v283_v0  ;;  %216 = vmatprep.mubr.msk.f32.mxu0 %vm284_vm0, %v283_v0  ;;  %v25_v2 = vld [vmem:[%s337_s1] sm:$0xff]  ;;  %vm104_vm2 = vcmask 64512  }
  0x14   :  { %219 = vmatprep.subr.mxu1 %v283_v0  ;;  %221 = vmatprep.mubr.msk.f32.mxu1 %vm284_vm0, %v283_v0 }
  0x15   :  { %215 = vmatpush3.xpose.msk.msra.mxu0 %vm26_vm1, %v24_v1  ;;  %220 = vmatpush3.msra.mxu1 %v24_v1 }
  0x18   :  { %217 = vmatmul.mubr.msk.f32.vlgmr.msra.gmra.mrb[0].mxu0 %vm26_vm1, %v25_v2 }
  0xeb   :  { %v99_v3 = vpop.f32.mrb[0].mxu0 }
  0xec   :  { %v103_v4 = vmul.f32 0.17677669, %v99_v3  ;;  %v218_v5 = vpop.f32.mrb[1].mxu0 }
  0xee   :  { %v105_v6 = vsel %vm104_vm2, %v103_v4, -inf }
  0xef   :  { %106 = vmax.xlane.f32.xlu0 %v105_v6 }
 0x17c   :  { %v107_v7 = vpop.xlane.xlu0 %106 }
 0x17d   :  { %v108_v8 = vsub.f32 %v103_v4, %v107_v7 }
 0x17f   :  { %v109_v9 = vmul.f32 1.442695, %v108_v8 }
 0x181   :  { %230 = vpow2.f32 %v109_v9 }
 0x18b   :  { %v231_v10 = vpop.eup %230 }
 0x18c   :  { %v111_v11 = vsel %vm104_vm2, %v231_v10, 0.0 }
 0x18d   :  { %112 = vadd.xlane.f32.xlu0 %v111_v11 }
 0x21a   :  { %v113_v12 = vpop.xlane.xlu0 %112 }
 0x21b   :  { %232 = vrcp.f32 %v113_v12 }
 0x225   :  { %v233_v13 = vpop.eup %232 }
 0x226   :  { %v115_v14 = vmul.f32 %v233_v13, %v231_v10 }
 0x228   :  { %222 = vmatmul.mubr.msk.f32.vlgmr.msra.gmra.mrb[0].mxu1 %vm104_vm2, %v115_v14 }
 0x2fb   :  { %v185_v15 = vpop.f32.mrb[0].mxu1 }
 0x2fc   :  { %189 = vst.msk [vmem:[#allocation5] sm:$0xff] %vm26_vm1, %v185_v15  ;;  %v223_v16 = vpop.f32.mrb[1].mxu1 }
 0x2fd   :  { %194 = vsyncadd [#allocation4], 96  ;;  %s285_s0 = smov [#allocation5]  }
 0x2fe   :  { %s195_s1 = sshll.u32 %s285_s0, 4  ;;  %s196_s1 = int_to_ptr.vmem [resolvable:$true] %s195_s1 }
 0x2ff   :  { %s256_s23 = scalar_lea.vmem %s196_s1, 32  ;;  %s260_s24 = scalar_lea.vmem %s196_s1, 128 }
 0x300   :  { %p257_p8 = scmp.ne.s32.totalorder %s196_s1, %s256_s23  ;;  %p261_p9 = scmp.lt.s32.totalorder %s196_s1, %s196_s1 }
 0x301   :  { %p262_p10 = scmp.lt.s32.totalorder %s260_s24, %s256_s23 }
 0x303   :  { %p263_p11 = por %p262_p10, %p261_p9 }
 0x305   :  { %p264_p12 = pnand %p263_p11, %p257_p8 }
 0x307   :  { %267 = shalt.err (!%p264_p12)
}
 0x308   :  { %s268_s27 = scalar_lea.hbm %s338_s2, 32 }
 0x309   :  { %p269_p13 = scmp.ne.s32.totalorder %s338_s2, %s268_s27  ;;  %p272_p0 = scmp.lt.u32.totalorder %s268_s27, %s338_s2 }
 0x30b   :  { %p274_p1 = pnand %p272_p0, %p269_p13 }
 0x30d   :  { %277 = shalt.err (!%p274_p1)
}
 0x30e   :  { %s286_s4 = smov 32   ;;  %s287_s5 = smov 2  }
 0x30f   :  { %201 = dma.vmem_to_hbm [thread:$0]  %s196_s1, 32, %s338_s2, [#allocation4], %s286_s4, %s286_s4, %s287_s5  }
 0x310   :  { %280 = dma.done.wait [#allocation4], 128  }
 0x311   :  { %281 = vsyncadd [#allocation4], 4294967168 }
 0x312   :  { %205 = vsyncpa [#allocation3], 1 }
 0x313   :  { %206 = vsyncpa [#allocation4], 1 }

// kernel: tpu_custom_call.1
= control target key start
LH: loop header
LB: loop body
LE: loop exit
PB: predicated region body
PF: predicated region fallthrough
CT: control target
= control target key end

     0   :  { %7 = vsyncpa [#allocation3], 0  ;;  %s336_s0 = inlined_call_operand.hbm [shape: f32[8,32], index: 0, kind: input, shape index: {}]   ;;  %s337_s1 = inlined_call_operand.vmem [shape: f32[2,32], index: 1, kind: input, shape index: {}]   ;;  %s338_s2 = inlined_call_operand.hbm [shape: f32[2,32], index: 2, kind: output, shape index: {}]  }
   0x1   :  { %8 = vsyncpa [#allocation4], 0  ;;  %s282_s9 = smov [#allocation2]   ;;  %s234_s13 = scalar_lea.hbm %s336_s0, 128 }
   0x2   :  { %s15_s10 = sshll.u32 %s282_s9, 4  ;;  %p235_p0 = scmp.ne.s32.totalorder %s336_s0, %s234_s13  ;;  %s16_s10 = int_to_ptr.vmem [resolvable:$true] %s15_s10 }
   0x3   :  { %p238_p1 = scmp.lt.u32.totalorder %s234_s13, %s336_s0 }
   0x5   :  { %p240_p2 = pnand %p238_p1, %p235_p0 }
   0x7   :  { %243 = shalt.err (!%p240_p2)
}
   0x8   :  { %s244_s18 = scalar_lea.vmem %s16_s10, 128  ;;  %p249_p4 = scmp.lt.s32.totalorder %s16_s10, %s16_s10 }
   0x9   :  { %p245_p3 = scmp.ne.s32.totalorder %s16_s10, %s244_s18  ;;  %p250_p5 = scmp.lt.s32.totalorder %s244_s18, %s244_s18 }
   0xb   :  { %p251_p6 = por %p250_p5, %p249_p4 }
   0xd   :  { %p252_p7 = pnand %p251_p6, %p245_p3 }
   0xf   :  { %255 = shalt.err (!%p252_p7)
}
  0x10   :  { %18 = dma.hbm_to_vmem [thread:$0]  %s336_s0, 128, %s16_s10, [#allocation3]  }
  0x11   :  { %278 = dma.done.wait [#allocation3], 128  }
  0x12   :  { %279 = vsyncadd [#allocation3], 4294967168  ;;  %v283_v0 = vmov 0.0   ;;  %vm284_vm0 = vmmov 0   ;;  %vm26_vm1 = vcmask 261120   ;;  %v24_v1 = vld [vmem:[#allocation2] sm:$0xff] }
  0x13   :  { %214 = vmatprep.subr.mxu0 %v283_v0  ;;  %216 = vmatprep.mubr.msk.f32.mxu0 %vm284_vm0, %v283_v0  ;;  %v25_v2 = vld [vmem:[%s337_s1] sm:$0xff]  ;;  %vm104_vm2 = vcmask 64512  }
  0x14   :  { %219 = vmatprep.subr.mxu1 %v283_v0  ;;  %221 = vmatprep.mubr.msk.f32.mxu1 %vm284_vm0, %v283_v0 }
  0x15   :  { %215 = vmatpush3.xpose.msk.msra.mxu0 %vm26_vm1, %v24_v1  ;;  %220 = vmatpush3.msra.mxu1 %v24_v1 }
  0x18   :  { %217 = vmatmul.mubr.msk.f32.vlgmr.msra.gmra.mrb[0].mxu0 %vm26_vm1, %v25_v2 }
  0xeb   :  { %v99_v3 = vpop.f32.mrb[0].mxu0 }
  0xec   :  { %v103_v4 = vmul.f32 0.17677669, %v99_v3  ;;  %v218_v5 = vpop.f32.mrb[1].mxu0 }
  0xee   :  { %v105_v6 = vsel %vm104_vm2, %v103_v4, -inf }
  0xef   :  { %106 = vmax.xlane.f32.xlu0 %v105_v6 }
 0x17c   :  { %v107_v7 = vpop.xlane.xlu0 %106 }
 0x17d   :  { %v108_v8 = vsub.f32 %v103_v4, %v107_v7 }
 0x17f   :  { %v109_v9 = vmul.f32 1.442695, %v108_v8 }
 0x181   :  { %230 = vpow2.f32 %v109_v9 }
 0x18b   :  { %v231_v10 = vpop.eup %230 }
 0x18c   :  { %v111_v11 = vsel %vm104_vm2, %v231_v10, 0.0 }
 0x18d   :  { %112 = vadd.xlane.f32.xlu0 %v111_v11 }
 0x21a   :  { %v113_v12 = vpop.xlane.xlu0 %112 }
 0x21b   :  { %232 = vrcp.f32 %v113_v12 }
 0x225   :  { %v233_v13 = vpop.eup %232 }
 0x226   :  { %v115_v14 = vmul.f32 %v233_v13, %v231_v10 }
 0x228   :  { %222 = vmatmul.mubr.msk.f32.vlgmr.msra.gmra.mrb[0].mxu1 %vm104_vm2, %v115_v14 }
 0x2fb   :  { %v185_v15 = vpop.f32.mrb[0].mxu1 }
 0x2fc   :  { %189 = vst.msk [vmem:[#allocation5] sm:$0xff] %vm26_vm1, %v185_v15  ;;  %v223_v16 = vpop.f32.mrb[1].mxu1 }
 0x2fd   :  { %194 = vsyncadd [#allocation4], 96  ;;  %s285_s0 = smov [#allocation5]  }
 0x2fe   :  { %s195_s1 = sshll.u32 %s285_s0, 4  ;;  %s196_s1 = int_to_ptr.vmem [resolvable:$true] %s195_s1 }
 0x2ff   :  { %s256_s23 = scalar_lea.vmem %s196_s1, 32  ;;  %s260_s24 = scalar_lea.vmem %s196_s1, 128 }
 0x300   :  { %p257_p8 = scmp.ne.s32.totalorder %s196_s1, %s256_s23  ;;  %p261_p9 = scmp.lt.s32.totalorder %s196_s1, %s196_s1 }
 0x301   :  { %p262_p10 = scmp.lt.s32.totalorder %s260_s24, %s256_s23 }
 0x303   :  { %p263_p11 = por %p262_p10, %p261_p9 }
 0x305   :  { %p264_p12 = pnand %p263_p11, %p257_p8 }
 0x307   :  { %267 = shalt.err (!%p264_p12)
}
 0x308   :  { %s268_s27 = scalar_lea.hbm %s338_s2, 32 }
 0x309   :  { %p269_p13 = scmp.ne.s32.totalorder %s338_s2, %s268_s27  ;;  %p272_p0 = scmp.lt.u32.totalorder %s268_s27, %s338_s2 }
 0x30b   :  { %p274_p1 = pnand %p272_p0, %p269_p13 }
 0x30d   :  { %277 = shalt.err (!%p274_p1)
}
 0x30e   :  { %s286_s4 = smov 32   ;;  %s287_s5 = smov 2  }
 0x30f   :  { %201 = dma.vmem_to_hbm [thread:$0]  %s196_s1, 32, %s338_s2, [#allocation4], %s286_s4, %s286_s4, %s287_s5  }
 0x310   :  { %280 = dma.done.wait [#allocation4], 128  }
 0x311   :  { %281 = vsyncadd [#allocation4], 4294967168 }
 0x312   :  { %205 = vsyncpa [#allocation3], 1 }
 0x313   :  { %206 = vsyncpa [#allocation4], 1 }

</bundles_post_ra>
